<compile_context>
chip_gen: v7x
topology: tpu7x:2x2x1
jax: 0.10.0
libtpu: 0.0.40
codegen_flags: <defaults>
</compile_context>

<pallas_src>
import functools

import jax
import jax.numpy as jnp
from jax.experimental import pallas as pl
from jax.experimental.pallas import tpu as pltpu

# ---------------- configuration (ResidualBlockNoBN, small demo size) ----------
NUM_FEAT = 8          # num_feat (small demo; W * C = 128 = one full lane axis)
RES_SCALE = 1.0       # res_scale
H = 16
W = 16
N = 2


def _conv3x3_fused_gemm(x, w_stacked, top_mask, bot_mask):
    """3x3 / stride 1 / pad 1 / no-bias conv on a lane-dense (rows, W*C) tile.

    x          : (rows, W*C) bf16, one or more full images stacked along rows.
    w_stacked  : (3*W*C, W*C) bf16; K-blocks ordered [kh=0 (up), kh=1, kh=2 (dn)],
                 each block a banded matrix folding the three kw taps + w padding.
    top_mask / bot_mask : (rows, 1) bool marking image-top / image-bottom rows
                 (only needed when a block holds more than one image), or None.
    Returns f32 (rows, W*C).
    """
    zero_row = jnp.zeros_like(x[:1])
    up = jnp.concatenate([zero_row, x[:-1]], axis=0)   # up[r] = x[r-1], row 0 = 0
    dn = jnp.concatenate([x[1:], zero_row], axis=0)    # dn[r] = x[r+1], last  = 0
    if top_mask is not None:
        up = jnp.where(top_mask, jnp.zeros_like(up), up)   # h padding at image tops
        dn = jnp.where(bot_mask, jnp.zeros_like(dn), dn)   # ... and image bottoms
    lhs = jnp.concatenate([up, x, dn], axis=1)         # (rows, 3*W*C), lane-aligned
    return jnp.dot(lhs, w_stacked, preferred_element_type=jnp.float32)


def resblock_kernel(x_ref, w1_ref, w2_ref, o_ref, *, img_h, images_per_block,
                    res_scale):
    # x_ref block: (rows, W*C) f32 lane-dense; weights: (3*W*C, W*C) bf16.
    x_f32 = x_ref[...]                                  # keep f32 identity path
    x = x_f32.astype(jnp.bfloat16)                      # bf16 operands for the MXU

    if images_per_block > 1:
        rows = x.shape[0]
        r = jax.lax.broadcasted_iota(jnp.int32, (rows, 1), 0)
        top_mask = (r % img_h) == 0
        bot_mask = (r % img_h) == (img_h - 1)
    else:
        # One image per block: the zero border rows in the slice/concat already
        # implement the h padding, no mask needed.
        top_mask = bot_mask = None

    h1 = _conv3x3_fused_gemm(x, w1_ref[...], top_mask, bot_mask)     # f32
    h1 = jnp.maximum(h1, 0.0).astype(jnp.bfloat16)                   # ReLU (f32) -> bf16
    h2 = _conv3x3_fused_gemm(h1, w2_ref[...], top_mask, bot_mask)    # f32

    # Residual epilogue in f32 (identity stays exact; module has bias=False).
    o_ref[...] = (x_f32 + res_scale * h2).astype(o_ref.dtype)


def _fold_conv_weights(w_hwio, w_spatial, dtype=jnp.bfloat16):
    """(3, 3, C, C) HWIO -> (3*W*C, W*C) stacked banded GEMM operand (bf16).

    For kernel row kh the block M_kh satisfies
        M_kh[(w+dw)*C + ci, w*C + co] = w_hwio[kh, dw+1, ci, co]
    for dw in {-1,0,1} and 0 <= w+dw < W (out-of-range taps stay zero, baking
    the horizontal 'same' padding into the weights).  Blocks are stacked along
    K in the order [kh=0, kh=1, kh=2] to match the [up; x; dn] LHS staging.
    """
    c = w_hwio.shape[2]
    lanes = w_spatial * c
    mats = []
    for kh in range(3):
        m = jnp.zeros((lanes, lanes), jnp.float32)
        for kw, dw in enumerate((-1, 0, 1)):
            shift = jnp.eye(w_spatial, k=-dw, dtype=jnp.float32)  # shift[w+dw, w] = 1
            m = m + jnp.kron(shift, w_hwio[kh, kw].astype(jnp.float32))
        mats.append(m)
    return jnp.concatenate(mats, axis=0).astype(dtype)  # (3*W*C, W*C)


def _default_grid_blocks(n):
    """Batch split: 1 step on single-TC chips (v5e/v6e) so all N images fold
    into the GEMM M dimension; 2-way parallel split on multi-TC chips (v7x,
    v4/v5p megacore) so both TensorCores get work.  Fallback = 2 (always
    correct, costs at most one ~0.35 us pipeline step on a single-TC chip)."""
    try:
        kind = jax.devices()[0].device_kind.lower()
    except Exception:
        kind = ""
    single_tc = any(t in kind for t in ("v5 lite", "v5e", "v6 lite", "v6e"))
    if single_tc or n == 1:
        return 1
    return min(n, 2)


def residual_block_no_bn(x_nhwc, w1_hwio, w2_hwio, *, res_scale=RES_SCALE,
                         grid_blocks=None):
    """x_nhwc: (N, H, W, C) float32 ; weights: (3, 3, C, C) HWIO float32."""
    n, h, w, c = x_nhwc.shape
    lanes = w * c                                       # 128 here
    if grid_blocks is None:
        grid_blocks = _default_grid_blocks(n)
    assert n % grid_blocks == 0
    ipb = n // grid_blocks                              # images per grid block
    rows = ipb * h                                      # GEMM M per block

    x2d = x_nhwc.reshape(n * h, lanes)                  # contiguous merge: free
    w1s = _fold_conv_weights(w1_hwio, w)                # bf16, (3*W*C, W*C)
    w2s = _fold_conv_weights(w2_hwio, w)

    kernel = functools.partial(resblock_kernel, img_h=h, images_per_block=ipb,
                               res_scale=float(res_scale))

    # VMEM at this size is tiny (2 x 96 KB bf16 weights + 2 x 16 KB activation
    # buffers); the banded (W*C)^2 folding is a small-size trick only — at
    # num_feat=64 restructure to keep C on the lane axis and tile over W.
    out2d = pl.pallas_call(
        kernel,
        out_shape=jax.ShapeDtypeStruct((n * h, lanes), x_nhwc.dtype),
        grid_spec=pltpu.PrefetchScalarGridSpec(
            num_scalar_prefetch=0,
            grid=(grid_blocks,),
            in_specs=[
                pl.BlockSpec((rows, lanes), lambda b: (b, 0)),
                pl.BlockSpec((3 * lanes, lanes), lambda b: (0, 0)),
                pl.BlockSpec((3 * lanes, lanes), lambda b: (0, 0)),
            ],
            out_specs=pl.BlockSpec((rows, lanes), lambda b: (b, 0)),
        ),
        compiler_params=pltpu.CompilerParams(
            dimension_semantics=("parallel",)),
    )(x2d, w1s, w2s)
    return out2d.reshape(n, h, w, c)


def make_weights(key, c):
    """Kaiming-normal (fan_in, gain=sqrt(2)) then *0.1, as in default_init_weights."""
    fan_in = c * 3 * 3
    std = (2.0 / fan_in) ** 0.5
    k1, k2 = jax.random.split(key)
    w1 = jax.random.normal(k1, (3, 3, c, c), jnp.float32) * std * 0.1
    w2 = jax.random.normal(k2, (3, 3, c, c), jnp.float32) * std * 0.1
    return w1, w2


if __name__ == "__main__":
    key = jax.random.PRNGKey(0)
    kx, kw = jax.random.split(key)

    # PyTorch-style NCHW input; the NCHW<->NHWC transposes below are interface
    # glue only — in a real network keep NHWC across the whole block stack.
    x_nchw = jax.random.normal(kx, (N, NUM_FEAT, H, W), jnp.float32)
    x_nhwc = jnp.transpose(x_nchw, (0, 2, 3, 1))

    w1, w2 = make_weights(kw, NUM_FEAT)

    out_nhwc = residual_block_no_bn(x_nhwc, w1, w2)
    out_nhwc = jax.block_until_ready(out_nhwc)
    out_nchw = jnp.transpose(out_nhwc, (0, 3, 1, 2))    # module-equivalent layout

    # Pure-JAX f32 reference (NHWC conv).  bf16 GEMM operands in the kernel
    # cost ~1e-3 absolute here, so the tolerance is loosened accordingly.
    def ref(x, w1, w2):
        dn = ("NHWC", "HWIO", "NHWC")
        c1 = jax.lax.conv_general_dilated(x, w1, (1, 1), "SAME",
                                          dimension_numbers=dn)
        c2 = jax.lax.conv_general_dilated(jnp.maximum(c1, 0.0), w2, (1, 1),
                                          "SAME", dimension_numbers=dn)
        return x + RES_SCALE * c2

    expected = ref(x_nhwc, w1, w2)
    assert jnp.allclose(out_nhwc, expected, atol=2e-2, rtol=2e-2), "mismatch"

    print("KERNEL_OK")
</pallas_src>

<mosaic_0001>
module attributes {stable_mosaic.version = 11 : i64} {
  func.func @resblock_kernel(%arg0: i32, %arg1: memref<16x128xf32, #tpu.memory_space<vmem>>, %arg2: memref<384x128xbf16, #tpu.memory_space<vmem>>, %arg3: memref<384x128xbf16, #tpu.memory_space<vmem>>, %arg4: memref<16x128xf32, #tpu.memory_space<vmem>>) attributes {dimension_semantics = [#tpu.dimension_semantics<parallel>], iteration_bounds = array<i64: 2>, scalar_prefetch = 0 : i64, scratch_operands = 0 : i64, tpu.core_type = #tpu.core_type<tc>, window_params = [{transform_indices = @transform_0, window_bounds = array<i64: 16, 128>}, {pipeline_mode = #tpu.pipeline_mode<synchronous>, transform_indices = @transform_1, window_bounds = array<i64: 384, 128>}, {pipeline_mode = #tpu.pipeline_mode<synchronous>, transform_indices = @transform_2, window_bounds = array<i64: 384, 128>}, {transform_indices = @transform_3, window_bounds = array<i64: 16, 128>}]} {
    %c0 = arith.constant 0 : index
    %c0_0 = arith.constant 0 : index
    %0 = vector.load %arg1[%c0, %c0_0] : memref<16x128xf32, #tpu.memory_space<vmem>>, vector<16x128xf32>
    %1 = arith.truncf %0 : vector<16x128xf32> to vector<16x128xbf16>
    %c0_1 = arith.constant 0 : index
    %c0_2 = arith.constant 0 : index
    %2 = vector.load %arg2[%c0_1, %c0_2] : memref<384x128xbf16, #tpu.memory_space<vmem>>, vector<384x128xbf16>
    %cst = arith.constant 0.000000e+00 : bf16
    %3 = vector.broadcast %cst : bf16 to vector<1x128xbf16>
    %4 = vector.extract_strided_slice %1 {offsets = [0, 0], sizes = [15, 128], strides = [1, 1]} : vector<16x128xbf16> to vector<15x128xbf16>
    %5 = tpu.concatenate %3, %4 in 0 : vector<1x128xbf16>, vector<15x128xbf16> -> vector<16x128xbf16>
    %6 = vector.extract_strided_slice %1 {offsets = [1, 0], sizes = [15, 128], strides = [1, 1]} : vector<16x128xbf16> to vector<15x128xbf16>
    %7 = tpu.concatenate %6, %3 in 0 : vector<15x128xbf16>, vector<1x128xbf16> -> vector<16x128xbf16>
    %8 = tpu.concatenate %5, %1, %7 in 1 : vector<16x128xbf16>, vector<16x128xbf16>, vector<16x128xbf16> -> vector<16x384xbf16>
    %cst_3 = arith.constant dense<0.000000e+00> : vector<16x128xf32>
    %9 = tpu.matmul %8, %2, %cst_3 {dimension_numbers = #tpu.dot_dimension_numbers<[1], [0], [0], [1], [0, 0, 1, 1], [], []>} : vector<16x384xbf16>, vector<384x128xbf16>, vector<16x128xf32> -> vector<16x128xf32>
    %cst_4 = arith.constant 0.000000e+00 : f32
    %10 = vector.broadcast %cst_4 : f32 to vector<16x128xf32>
    %11 = arith.maximumf %9, %10 : vector<16x128xf32>
    %12 = arith.truncf %11 : vector<16x128xf32> to vector<16x128xbf16>
    %c0_5 = arith.constant 0 : index
    %c0_6 = arith.constant 0 : index
    %13 = vector.load %arg3[%c0_5, %c0_6] : memref<384x128xbf16, #tpu.memory_space<vmem>>, vector<384x128xbf16>
    %cst_7 = arith.constant 0.000000e+00 : bf16
    %14 = vector.broadcast %cst_7 : bf16 to vector<1x128xbf16>
    %15 = vector.extract_strided_slice %12 {offsets = [0, 0], sizes = [15, 128], strides = [1, 1]} : vector<16x128xbf16> to vector<15x128xbf16>
    %16 = tpu.concatenate %14, %15 in 0 : vector<1x128xbf16>, vector<15x128xbf16> -> vector<16x128xbf16>
    %17 = vector.extract_strided_slice %12 {offsets = [1, 0], sizes = [15, 128], strides = [1, 1]} : vector<16x128xbf16> to vector<15x128xbf16>
    %18 = tpu.concatenate %17, %14 in 0 : vector<15x128xbf16>, vector<1x128xbf16> -> vector<16x128xbf16>
    %19 = tpu.concatenate %16, %12, %18 in 1 : vector<16x128xbf16>, vector<16x128xbf16>, vector<16x128xbf16> -> vector<16x384xbf16>
    %cst_8 = arith.constant dense<0.000000e+00> : vector<16x128xf32>
    %20 = tpu.matmul %19, %13, %cst_8 {dimension_numbers = #tpu.dot_dimension_numbers<[1], [0], [0], [1], [0, 0, 1, 1], [], []>} : vector<16x384xbf16>, vector<384x128xbf16>, vector<16x128xf32> -> vector<16x128xf32>
    %cst_9 = arith.constant 1.000000e+00 : f32
    %21 = vector.broadcast %cst_9 : f32 to vector<16x128xf32>
    %22 = arith.mulf %21, %20 : vector<16x128xf32>
    %23 = arith.addf %0, %22 : vector<16x128xf32>
    %c0_10 = arith.constant 0 : index
    %c0_11 = arith.constant 0 : index
    %24 = vector.load %arg4[%c0_10, %c0_11] : memref<16x128xf32, #tpu.memory_space<vmem>>, vector<16x128xf32>
    tpu.vector_store %arg4[%c0_10, %c0_11], %23 {strides = array<i32>} : memref<16x128xf32, #tpu.memory_space<vmem>>, vector<16x128xf32>,
    return
  }
  func.func @transform_0(%arg0: i32) -> (i32, i32) {
    %c0_i32 = arith.constant 0 : i32
    %c0_i32_0 = arith.constant 0 : i32
    return %arg0, %c0_i32 : i32, i32
  }
  func.func @transform_1(%arg0: i32) -> (i32, i32) {
    %c0_i32 = arith.constant 0 : i32
    %c0_i32_0 = arith.constant 0 : i32
    %c0_i32_1 = arith.constant 0 : i32
    return %c0_i32, %c0_i32_0 : i32, i32
  }
  func.func @transform_2(%arg0: i32) -> (i32, i32) {
    %c0_i32 = arith.constant 0 : i32
    %c0_i32_0 = arith.constant 0 : i32
    %c0_i32_1 = arith.constant 0 : i32
    return %c0_i32, %c0_i32_0 : i32, i32
  }
  func.func @transform_3(%arg0: i32) -> (i32, i32) {
    %c0_i32 = arith.constant 0 : i32
    %c0_i32_0 = arith.constant 0 : i32
    return %arg0, %c0_i32 : i32, i32
  }
}

</mosaic_0001>

<bundles_post_ra>
// kernel: tpu_custom_call.1
= control target key start
LH: loop header
LB: loop body
LE: loop exit
PB: predicated region body
PF: predicated region fallthrough
CT: control target
= control target key end

     0   :  { %8 = vsyncpa [#allocation3], 0  ;;  %s1687_s0 = inlined_call_operand.hbm [shape: f32[32,128], index: 0, kind: input, shape index: {}]   ;;  %s1688_s1 = inlined_call_operand.hbm [shape: bf16[384,128], index: 1, kind: input, shape index: {}]   ;;  %s1689_s2 = inlined_call_operand.hbm [shape: bf16[384,128], index: 2, kind: input, shape index: {}]   ;;  %s1690_s3 = inlined_call_operand.hbm [shape: f32[32,128], index: 3, kind: output, shape index: {}]  }
   0x1   :  { %10 = vsyncpa [#allocation3 + $0x1], 0 }
   0x2   :  { %11 = vsyncpa [#allocation6], 0 }
   0x3   :  { %12 = vsyncpa [#allocation4], 0 }
   0x4   :  { %14 = vsyncpa [#allocation4 + $0x1], 0  ;;  %s1400_s12 = smov 0   ;;  %s1402_s13 = smov 0  }
   0x5   :  { %s1404_s14 = smov 0   ;;  %s1406_s15 = smov 0  }
   0x6 LB: > { %s1421_s16 = sadd.s32 4294967295, %s1366_s15   ;;  %s917_s17 = sadd.s32 4294967294, %s1366_s15   ;;  %s1366_s15 = sphi %s1406_s15, %s1714_s15   ;;  %s1362_s14 = sphi %s1404_s14, %s1713_s14   ;;  %s1358_s13 = sphi %s1402_s13, %s1712_s13   ;;  %s1354_s12 = sphi %s1400_s12, %s1711_s12  }
   0x7   : > { %p40_p0 = scmp.ne.s32.totalorder %s1358_s13, %s1354_s12  ;;  %p1691_p1 = scmp.eq.s32.totalorder %s1421_s16, 0 }
   0x8   : > { %p112_p3 = scmp.eq.s32.totalorder %s917_s17, 1  ;;  %p918_p5 = scmp.ge.s32.totalorder %s1366_s15, 1 }
   0x9   : > { %p1430_p4 = por %p1691_p1, %p40_p0  ;;  %p119_p7 = scmp.lt.s32.totalorder %s1366_s15, 3 }
   0xa   : > { %p1435_p6 = por %p112_p3, %p40_p0  ;;  %s1368_s21 = smov [#allocation5]  }
   0xb   : > { %s1694_s18 = scalar_select %p1430_p4, 1, 0 }
   0xc   : > { %s1695_s19 = scalar_select %p1435_p6, 1, 0 }
   0xd   : > { %p1440_p8 = pnand %p918_p5, %p119_p7  ;;  %s131_s22 = sshll.u32 %s1368_s21, 4  ;;  %s1444_s22 = int_to_ptr.vmem [resolvable:$true] %s131_s22 }
   0xe   : > { %s1369_s24 = smov [#allocation7]   ;;  %s1210_s28 = scalar_lea.hbm %s1688_s1, 3072 }
   0xf   : > { %p1099_p9 = pneg %p1440_p8  ;;  %s144_s25 = sshll.u32 %s1369_s24, 4  ;;  %s1455_s25 = int_to_ptr.vmem [resolvable:$true] %s144_s25 }
  0x10   : > { %p1211_p12 = scmp.ne.s32.totalorder %s1688_s1, %s1210_s28  ;;  %p1217_p5 = scmp.lt.u32.totalorder %s1210_s28, %s1688_s1 }
  0x11   : > { %p1451_p11 = pnand %p1099_p9, %p1691_p1 }
  0x13   : > { %p1212_p13 = pneg %p1451_p11 }
  0x15   : > { %p1213_p0 = pnand %p1212_p13, %p1211_p12 }
  0x17   : > { %p1214_p3 = pneg %p1213_p0 }
  0x19   : > { %p1219_p7 = pnand %p1217_p5, %p1214_p3 }
  0x1b   : > { %1222 = shalt.err (!%p1219_p7)
}
  0x1c   : > { %s1223_s6 = scalar_lea.vmem %s1444_s22, 3072  ;;  %p1231_p2 = scmp.lt.s32.totalorder %s1444_s22, %s1444_s22 }
  0x1d   : > { %p1224_p9 = scmp.ne.s32.totalorder %s1444_s22, %s1223_s6  ;;  %p1232_p12 = scmp.lt.s32.totalorder %s1223_s6, %s1223_s6 }
  0x1f   : > { %p1226_p10 = pnand %p1224_p9, %p1212_p13  ;;  %p1233_p0 = por %p1232_p12, %p1231_p2 }
  0x21   : > { %p1227_p1 = pneg %p1226_p10 }
  0x23   : > { %p1234_p6 = pnand %p1233_p0, %p1227_p1 }
  0x25   : > { %1237 = shalt.err (!%p1234_p6)
}
  0x26   : > { %s1370_s7 = smov 64   ;;  %s1371_s8 = smov 4  }
  0x27   : > { %1102 = dma.hbm_to_vmem [thread:$0]  (!%p1451_p11), %s1688_s1, 3072, %s1444_s22, [#allocation6], %s1370_s7, %s1370_s7, %s1371_s8  }
  0x28   : > { %s1238_s21 = scalar_lea.hbm %s1689_s2, 3072 }
  0x29   : > { %p1239_p2 = scmp.ne.s32.totalorder %s1689_s2, %s1238_s21  ;;  %p1245_p10 = scmp.lt.u32.totalorder %s1238_s21, %s1689_s2 }
  0x2b   : > { %p1241_p1 = pnand %p1239_p2, %p1212_p13 }
  0x2d   : > { %p1242_p6 = pneg %p1241_p1 }
  0x2f   : > { %p1247_p3 = pnand %p1245_p10, %p1242_p6 }
  0x31   : > { %1250 = shalt.err (!%p1247_p3)
}
  0x32   : > { %s1251_s22 = scalar_lea.vmem %s1455_s25, 3072  ;;  %p1259_p12 = scmp.lt.s32.totalorder %s1455_s25, %s1455_s25 }
  0x33   : > { %p1252_p5 = scmp.ne.s32.totalorder %s1455_s25, %s1251_s22  ;;  %p1260_p0 = scmp.lt.s32.totalorder %s1251_s22, %s1251_s22 }
  0x35   : > { %p1254_p7 = pnand %p1252_p5, %p1212_p13  ;;  %p1261_p2 = por %p1260_p0, %p1259_p12 }
  0x37   : > { %p1255_p9 = pneg %p1254_p7 }
  0x39   : > { %p1262_p1 = pnand %p1261_p2, %p1255_p9 }
  0x3b   : > { %1265 = shalt.err (!%p1262_p1)
}
  0x3c   : > { %1105 = dma.hbm_to_vmem [thread:$0]  (!%p1451_p11), %s1689_s2, 3072, %s1455_s25, [#allocation6], %s1370_s7, %s1370_s7, %s1371_s8  }
  0x3d   : > { %s1510_s4 = sadd.s32 1, %s1366_s15   ;;  %s27_s23 = sadd.s32 1, %s1362_s14 }
  0x3e   : > { %s24_s5 = ssub.s32 %s1366_s15, %s1510_s4  ;;  %p34_p13 = scmp.ne.s32.totalorder %s1362_s14, %s1358_s13 }
  0x3f   : > { %p25_p6 = scmp.eq.s32.totalorder %s24_s5, 0  ;;  %p35_p10 = scmp.eq.s32.totalorder %s1366_s15, 0 }
  0x40   : > { %p1698_p3 = scmp.eq.s32.totalorder %s1421_s16, 1  ;;  %p1116_p7 = scmp.lt.s32.totalorder %s1366_s15, 2 }
  0x41   : > { %s1526_s9 = scalar_select %p25_p6, %s1362_s14, %s27_s23  }
  0x42   : > { %p1520_p5 = por %p1698_p3, %p34_p13  ;;  %p36_p9 = por %p35_p10, %p34_p13 }
  0x43   : > { %s158_s10 = sand.u32 1, %s1362_s14   ;;  %s983_s25 = sshll.u32 %s1366_s15, 8 }
  0x44   : > { %s1699_s6 = scalar_select %p1520_p5, 1, 0 }
  0x45   : > { %s922_s11 = sshll.u32 %s158_s10, 4  ;;  %s1533_s17 = scalar_lea.hbm %s1687_s0, %s983_s25 }
  0x46   : > { %s162_s21 = scalar_lea.vmem [#allocation2], %s922_s11  ;;  %p1537_p11 = pnand %p1116_p7, %p36_p9 }
  0x47   : > { %s169_s24 = sshll.u32 %s162_s21, 4  ;;  %s1541_s27 = scalar_lea.sflag [#allocation3], %s158_s10  ;;  %s1535_s24 = int_to_ptr.vmem [resolvable:$true] %s169_s24 }
  0x48   : > { %s1266_s28 = scalar_lea.hbm %s1533_s17, 256  ;;  %p1268_p0 = pneg %p1537_p11 }
  0x49   : > { %p1267_p12 = scmp.ne.s32.totalorder %s1533_s17, %s1266_s28  ;;  %s1271_s30 = scalar_lea.hbm %s1687_s0, 512 }
  0x4a   : > { %p1272_p13 = scmp.lt.u32.totalorder %s1533_s17, %s1687_s0  ;;  %p1273_p6 = scmp.lt.u32.totalorder %s1271_s30, %s1266_s28 }
  0x4b   : > { %p1269_p2 = pnand %p1268_p0, %p1267_p12  ;;  %p1275_p3 = scmp.lt.u32.totalorder %s1266_s28, %s1533_s17 }
  0x4c   : > { %p1274_p10 = por %p1273_p6, %p1272_p13 }
  0x4d   : > { %p1270_p1 = pneg %p1269_p2 }
  0x4e   : > { %p1276_p7 = por %p1275_p3, %p1274_p10 }
  0x50   : > { %p1277_p9 = pnand %p1276_p7, %p1270_p1 }
  0x52   : > { %1280 = shalt.err (!%p1277_p9)
}
  0x53   : > { %s1281_s10 = scalar_lea.vmem %s1535_s24, 256  ;;  %s1372_s11 = smov [#allocation2]  }
  0x54   : > { %p1282_p12 = scmp.ne.s32.totalorder %s1535_s24, %s1281_s10  ;;  %s1286_s25 = sshll.u32 %s1372_s11, 4  ;;  %s1287_s25 = int_to_ptr.vmem [resolvable:$false] %s1286_s25 }
  0x55   : > { %s1288_s7 = scalar_lea.vmem %s1287_s25, 512  ;;  %p1289_p4 = scmp.lt.s32.totalorder %s1535_s24, %s1287_s25 }
  0x56   : > { %p1284_p2 = pnand %p1282_p12, %p1268_p0  ;;  %p1290_p13 = scmp.lt.s32.totalorder %s1288_s7, %s1281_s10 }
  0x58   : > { %p1285_p5 = pneg %p1284_p2  ;;  %p1291_p6 = por %p1290_p13, %p1289_p4 }
  0x5a   : > { %p1292_p10 = pnand %p1291_p6, %p1285_p5 }
  0x5c   : > { %1295 = shalt.err (!%p1292_p10)
}
  0x5d   : > { %s1373_s8 = smov 128   ;;  %s1374_s21 = smov 8  }
  0x5e   : > { %1109 = dma.hbm_to_vmem [thread:$0]  (!%p1537_p11), %s1533_s17, 256, %s1535_s24, %s1541_s27, %s1373_s8, %s1373_s8, %s1374_s21  }
  0x5f   : > { %181 = sbr.rel (%p1440_p8) target bundleno = 606 (0x25e), region = 32  ;;  %s1572_s28 = sand.u32 (!%p1440_p8), 1, %s1358_s13  }
  0x60   : > { %s926_s22 = sshll.u32 (!%p1440_p8), %s1572_s28, 4  ;;  %s184_s29 = scalar_lea.sflag (!%p1440_p8), [#allocation3], %s1572_s28 }
  0x61   : > { %s1578_s30 = scalar_lea.vmem (!%p1440_p8), [#allocation2], %s926_s22  ;;  %p1701_p4 = scmp.ne.s32.totalorder (!%p1440_p8), %s1694_s18, 0 }
  0x66   : > { %1341 = dma.done.wait (%p1701_p4), %s184_s29, 256  }
  0x67   : > { %1343 = vsyncadd (%p1701_p4), %s184_s29, 4294967040  ;;  %p1702_p5 = scmp.eq.s32.totalorder %s1421_s16, 0 }
  0x69   : > { %1345 = dma.done.wait (%p1702_p5), [#allocation6], 6144   ;;  %p1703_p8 = pmov %p1702_p5 }
  0x6a   : > { %v1375_v0 = vmov 0.0   ;;  %vm1376_vm0 = vmmov 0   ;;  %v1162_v1 = vld [vmem:[#allocation5 + $0x40] sm:$0xff]   ;;  %v1165_v4 = vld [vmem:[#allocation5 + $0x48] sm:$0xff]   ;;  %v1168_v7 = vld [vmem:[#allocation5 + $0x50] sm:$0xff]   ;;  %vm280_vm2 = vcmask 1040384  }
  0x6b   : > { %1347 = vsyncadd (%p1703_p8), [#allocation6], 4294961152  ;;  %1047 = vmatprep.subr.bf16.mxu1 %v1375_v0  ;;  %1063 = vmatprep.mubr.msk.bf16.mxu1 %vm1376_vm0, %v1375_v0  ;;  %v1163_v2 = vld [vmem:[#allocation5] sm:$0xff]   ;;  %v1166_v5 = vld [vmem:[#allocation5 + $0x8] sm:$0xff]   ;;  %vm281_vm1 = vsmask.f32 256 }
  0x6c   : > { %985 = vmatprep.subr.bf16.mxu0 %v1162_v1  ;;  %v1164_v3 = vld [vmem:[#allocation5 + $0x80] sm:$0xff]   ;;  %v1167_v6 = vld [vmem:[#allocation5 + $0x88] sm:$0xff]   ;;  %v1169_v8 = vld [vmem:[#allocation5 + $0x10] sm:$0xff]   ;;  %vm288_vm4 = vsmask.f32 7424  ;;  %vm287_vm5 = vcmask 1047552  }
  0x6d   : > { %986 = vmatpush3.bf16.msra.mxu0 %v1163_v2  ;;  %1048 = vmatpush3.bf16.msra.mxu1 %v1164_v3  ;;  %v1170_v9 = vld [vmem:[#allocation5 + $0x90] sm:$0xff]   ;;  %v1171_v10 = vld [vmem:[#allocation5 + $0x58] sm:$0xff]   ;;  %v1174_v13 = vld [vmem:[#allocation5 + $0x60] sm:$0xff]   ;;  %s217_s18 = scalar_lea.vmem [#allocation8], %s926_s22  ;;  %s984_s17 = sshll.u32 %s1421_s16, 8 }
  0x6e   : > { %987 = vmatprep.subr.bf16.mxu0 %v1165_v4  ;;  %1049 = vmatprep.subr.bf16.mxu1 %v1375_v0  ;;  %v1172_v11 = vld [vmem:[#allocation5 + $0x18] sm:$0xff]   ;;  %v1175_v14 = vld [vmem:[#allocation5 + $0x20] sm:$0xff]   ;;  %v1177_v16 = vld [vmem:[#allocation5 + $0x68] sm:$0xff]   ;;  %s825_s20 = sshll.u32 %s217_s18, 4  ;;  %s1642_s27 = scalar_lea.hbm %s1690_s3, %s984_s17  ;;  %s1637_s20 = int_to_ptr.vmem [resolvable:$true] %s825_s20 }
  0x6f   : > { %v1173_v12 = vld [vmem:[#allocation5 + $0x98] sm:$0xff]   ;;  %v1176_v15 = vld [vmem:[#allocation5 + $0xa0] sm:$0xff]   ;;  %v1178_v17 = vld [vmem:[#allocation5 + $0x28] sm:$0xff]   ;;  %s812_s23 = scalar_lea.sflag [#allocation4], %s1572_s28  ;;  %s1296_s5 = scalar_lea.vmem %s1637_s20, 256 }
  0x70   : > { %v1179_v18 = vld [vmem:[#allocation5 + $0xa8] sm:$0xff]   ;;  %v1180_v19 = vld [vmem:[#allocation5 + $0x70] sm:$0xff]   ;;  %v1183_v22 = vld [vmem:[#allocation5 + $0x78] sm:$0xff]   ;;  %p1297_p11 = scmp.ne.s32.totalorder %s1637_s20, %s1296_s5  ;;  %p1708_p0 = scmp.ne.s32.totalorder %s1699_s6, 0 }
  0x71   : > { %988 = vmatpush3.bf16.msra.mxu0 %v1166_v5  ;;  %1050 = vmatpush3.bf16.msra.mxu1 %v1167_v6  ;;  %v1181_v20 = vld [vmem:[#allocation5 + $0x30] sm:$0xff]   ;;  %v1600_v24 = vld [vmem:[%s1578_s30 + $0x8] sm:$0xff]  ;;  %vm1606_vm3 = vmand %vm280_vm2, %vm281_vm1  ;;  %s1377_s16 = smov [#allocation8]  }
  0x72   : > { %989 = vmatprep.subr.bf16.mxu0 %v1168_v7  ;;  %1051 = vmatprep.subr.bf16.mxu1 %v1375_v0  ;;  %v1182_v21 = vld [vmem:[#allocation5 + $0xb0] sm:$0xff]   ;;  %v1184_v27 = vld [vmem:[#allocation5 + $0x38] sm:$0xff]   ;;  %v1186_v31 = vld [vmem:[#allocation7 + $0x40] sm:$0xff]   ;;  %p1298_p1 = pnand %p1297_p11, %p1708_p0  ;;  %s1300_s10 = sshll.u32 %s1377_s16, 4  ;;  %s1301_s10 = int_to_ptr.vmem [resolvable:$false] %s1300_s10 }
  0x73   : > { %v1597_v23 = vld [vmem:[%s1578_s30] sm:$0xff]  ;;  %v1185_v28 = vld [vmem:[#allocation5 + $0xb8] sm:$0xff]   ;;  %vm1611_vm6 = vmand %vm287_vm5, %vm288_vm4  ;;  %s1302_s11 = scalar_lea.vmem %s1301_s10, 512  ;;  %p1303_p7 = scmp.lt.s32.totalorder %s1637_s20, %s1301_s10 }
  0x74   : > { %v223_v25 = vpack.c.bf16 %v1600_v24, %v1597_v23  ;;  %v1187_v35 = vld [vmem:[#allocation7] sm:$0xff]   ;;  %v1189_v39 = vld [vmem:[#allocation7 + $0x48] sm:$0xff]   ;;  %v1192_v44 = vld [vmem:[#allocation7 + $0x50] sm:$0xff]   ;;  %p1299_p3 = pneg %p1298_p1  ;;  %p1304_p9 = scmp.lt.s32.totalorder %s1302_s11, %s1296_s5 }
  0x75   : > { %990 = vmatpush3.bf16.msra.mxu0 %v1169_v8  ;;  %1052 = vmatpush3.bf16.msra.mxu1 %v1170_v9  ;;  %v1188_v38 = vld [vmem:[#allocation7 + $0x80] sm:$0xff]   ;;  %v1190_v42 = vld [vmem:[#allocation7 + $0x8] sm:$0xff]   ;;  %v1193_v45 = vld [vmem:[#allocation7 + $0x10] sm:$0xff]  }
  0x76   : > { %991 = vmatprep.subr.bf16.mxu0 %v1171_v10  ;;  %1053 = vmatprep.subr.bf16.mxu1 %v1375_v0  ;;  %v273_v29 = vshrl.u32 %v223_v25, 16  ;;  %v276_v30 = vshll.u32 %v223_v25, 16  ;;  %v1191_v43 = vld [vmem:[#allocation7 + $0x88] sm:$0xff]   ;;  %v1194_v46 = vld [vmem:[#allocation7 + $0x90] sm:$0xff]   ;;  %v1195_v47 = vld [vmem:[#allocation7 + $0x58] sm:$0xff]   ;;  %p1305_p12 = por %p1304_p9, %p1303_p7 }
  0x77   : > { %467 = vmatprep.mubr.bf16.mxu0 %v223_v25  ;;  %v1196_v48 = vld [vmem:[#allocation7 + $0x18] sm:$0xff]   ;;  %v1198_v50 = vld [vmem:[#allocation7 + $0x60] sm:$0xff]   ;;  %v1201_v53 = vld [vmem:[#allocation7 + $0x68] sm:$0xff]  }
  0x78   : > { %v275_v32 = vrot.slane %v273_v29, 7  ;;  %v284_v33 = vrot.slane %v276_v30, 1  ;;  %v1197_v49 = vld [vmem:[#allocation7 + $0x98] sm:$0xff]   ;;  %v1199_v51 = vld [vmem:[#allocation7 + $0x20] sm:$0xff]   ;;  %v1202_v54 = vld [vmem:[#allocation7 + $0x28] sm:$0xff]   ;;  %p1306_p2 = pnand %p1305_p12, %p1299_p3 }
  0x79   : > { %992 = vmatpush3.bf16.msra.mxu0 %v1172_v11  ;;  %1054 = vmatpush3.bf16.msra.mxu1 %v1173_v12  ;;  %v1200_v52 = vld [vmem:[#allocation7 + $0xa0] sm:$0xff]   ;;  %v1203_v55 = vld [vmem:[#allocation7 + $0xa8] sm:$0xff]   ;;  %v1204_v56 = vld [vmem:[#allocation7 + $0x70] sm:$0xff]  }
  0x7a   : > { %993 = vmatprep.subr.bf16.mxu0 %v1174_v13  ;;  %1055 = vmatprep.subr.bf16.mxu1 %v1375_v0  ;;  %v278_v36 = vor.u32 %v276_v30, %v275_v32  ;;  %v285_v37 = vor.u32 %v284_v33, %v273_v29  ;;  %v1205_v57 = vld [vmem:[#allocation7 + $0x30] sm:$0xff]   ;;  %v1207_v59 = vld [vmem:[#allocation7 + $0x78] sm:$0xff]  }
  0x7b   : > { %v1206_v58 = vld [vmem:[#allocation7 + $0xb0] sm:$0xff]   ;;  %v1208_v60 = vld [vmem:[#allocation7 + $0x38] sm:$0xff]  }
  0x7c   : > { %v283_v40 = vsel %vm1606_vm3, 0, %v278_v36  ;;  %v290_v41 = vsel %vm1611_vm6, %v285_v37, 0  ;;  %v1209_v61 = vld [vmem:[#allocation7 + $0xb8] sm:$0xff]  }
  0x7d   : > { %994 = vmatpush3.bf16.msra.mxu0 %v1175_v14  ;;  %1056 = vmatpush3.bf16.msra.mxu1 %v1176_v15 }
  0x7e   : > { %995 = vmatprep.subr.bf16.mxu0 %v1177_v16  ;;  %1057 = vmatprep.subr.bf16.mxu1 %v1375_v0 }
  0x81   : > { %996 = vmatpush3.bf16.msra.mxu0 %v1178_v17  ;;  %1058 = vmatpush3.bf16.msra.mxu1 %v1179_v18 }
  0x82   : > { %997 = vmatprep.subr.bf16.mxu0 %v1180_v19  ;;  %1059 = vmatprep.subr.bf16.mxu1 %v1375_v0 }
  0x85   : > { %998 = vmatpush3.bf16.msra.mxu0 %v1181_v20  ;;  %1060 = vmatpush3.bf16.msra.mxu1 %v1182_v21 }
  0x86   : > { %999 = vmatprep.subr.bf16.mxu0 %v1183_v22  ;;  %1061 = vmatprep.subr.bf16.mxu1 %v1375_v0 }
  0x89   : > { %1000 = vmatpush3.bf16.msra.mxu0 %v1184_v27  ;;  %1062 = vmatpush3.bf16.msra.mxu1 %v1185_v28 }
  0x8a   : > { %1016 = vmatprep.subr.bf16.mxu0 %v1186_v31  ;;  %1067 = vmatprep.subr.bf16.mxu1 %v1375_v0 }
  0x8c   : > { %468 = vmatmul.mubr.bf16.vlgmr.msra.gmra.mrb[0].mxu0 %v283_v40  ;;  %1064 = vmatmul.mubr.bf16.vlgmr.msra.gmra.mrb[0].mxu1 %v290_v41 }
  0x8d   : > { %1017 = vmatpush3.bf16.msra.mxu0 %v1187_v35  ;;  %1068 = vmatpush3.bf16.msra.mxu1 %v1188_v38 }
  0x8e   : > { %1018 = vmatprep.subr.bf16.mxu0 %v1189_v39  ;;  %1069 = vmatprep.subr.bf16.mxu1 %v1375_v0 }
  0x8f   : > { %1083 = vmatprep.mubr.msk.bf16.mxu1 %vm1376_vm0, %v1375_v0 }
  0x91   : > { %1019 = vmatpush3.bf16.msra.mxu0 %v1190_v42  ;;  %1070 = vmatpush3.bf16.msra.mxu1 %v1191_v43 }
  0x92   : > { %1020 = vmatprep.subr.bf16.mxu0 %v1192_v44  ;;  %1071 = vmatprep.subr.bf16.mxu1 %v1375_v0 }
  0x95   : > { %1021 = vmatpush3.bf16.msra.mxu0 %v1193_v45  ;;  %1072 = vmatpush3.bf16.msra.mxu1 %v1194_v46 }
  0x96   : > { %1022 = vmatprep.subr.bf16.mxu0 %v1195_v47  ;;  %1073 = vmatprep.subr.bf16.mxu1 %v1375_v0 }
  0x99   : > { %1023 = vmatpush3.bf16.msra.mxu0 %v1196_v48  ;;  %1074 = vmatpush3.bf16.msra.mxu1 %v1197_v49 }
  0x9a   : > { %1075 = vmatprep.subr.bf16.mxu1 %v1375_v0  ;;  %1024 = vmatprep.subr.bf16.mxu0 %v1198_v50 }
  0x9d   : > { %1025 = vmatpush3.bf16.msra.mxu0 %v1199_v51  ;;  %1076 = vmatpush3.bf16.msra.mxu1 %v1200_v52 }
  0x9e   : > { %1077 = vmatprep.subr.bf16.mxu1 %v1375_v0  ;;  %1026 = vmatprep.subr.bf16.mxu0 %v1201_v53 }
  0xa1   : > { %1027 = vmatpush3.bf16.msra.mxu0 %v1202_v54  ;;  %1078 = vmatpush3.bf16.msra.mxu1 %v1203_v55 }
  0xa2   : > { %1028 = vmatprep.subr.bf16.mxu0 %v1204_v56  ;;  %1079 = vmatprep.subr.bf16.mxu1 %v1375_v0 }
  0xa5   : > { %1029 = vmatpush3.bf16.msra.mxu0 %v1205_v57  ;;  %1080 = vmatpush3.bf16.msra.mxu1 %v1206_v58 }
  0xa6   : > { %1030 = vmatprep.subr.bf16.mxu0 %v1207_v59  ;;  %1081 = vmatprep.subr.bf16.mxu1 %v1375_v0 }
  0xa9   : > { %1031 = vmatpush3.bf16.msra.mxu0 %v1208_v60  ;;  %1082 = vmatpush3.bf16.msra.mxu1 %v1209_v61 }
 0x15f   : > { %v1001_v62 = vpop.f32.mrb[0].mxu0  ;;  %v510_v63 = vpop.f32.mrb[0].mxu1 }
 0x160   : > { %v1002_v1 = vpop.f32.mrb[1].mxu0  ;;  %v1065_v3 = vpop.f32.mrb[1].mxu1 }
 0x161   : > { %v1003_v2 = vadd.f32 %v1002_v1, %v1001_v62  ;;  %v1004_v4 = vpop.f32.mrb[2].mxu0  ;;  %v513_v5 = vpop.f32.mrb[2].mxu1 }
 0x162   : > { %v1005_v6 = vpop.f32.mrb[3].mxu0  ;;  %v1066_v9 = vpop.f32.mrb[3].mxu1 }
 0x163   : > { %v511_v7 = vadd.f32 %v1003_v2, %v510_v63  ;;  %v1006_v8 = vadd.f32 %v1005_v6, %v1004_v4 }
 0x165   : > { %v514_v10 = vadd.f32 %v1006_v8, %v513_v5  ;;  %v517_v11 = vmax.f32 %v511_v7, 0.0 }
 0x167   : > { %v518_v12 = vmax.f32 %v514_v10, 0.0 }
 0x169   : > { %v519_v13 = vpack.c.bf16 %v518_v12, %v517_v11 }
 0x16b   : > { %v569_v14 = vshrl.u32 %v519_v13, 16  ;;  %757 = vmatprep.mubr.bf16.mxu0 %v519_v13  ;;  %v572_v0 = vshll.u32 %v519_v13, 16 }
 0x16d   : > { %v571_v15 = vrot.slane %v569_v14, 7  ;;  %v577_v16 = vrot.slane %v572_v0, 1 }
 0x16f   : > { %v574_v17 = vor.u32 %v572_v0, %v571_v15  ;;  %v578_v18 = vor.u32 %v577_v16, %v569_v14 }
 0x171   : > { %v576_v19 = vsel %vm1606_vm3, 0, %v574_v17  ;;  %v580_v20 = vsel %vm1611_vm6, %v578_v18, 0 }
 0x172   : > { %758 = vmatmul.mubr.bf16.vlgmr.msra.gmra.mrb[4].mxu0 %v576_v19  ;;  %1084 = vmatmul.mubr.bf16.vlgmr.msra.gmra.mrb[4].mxu1 %v580_v20 }
 0x245   : > { %v1032_v21 = vpop.f32.mrb[4].mxu0  ;;  %v800_v22 = vpop.f32.mrb[4].mxu1 }
 0x246   : > { %v1033_v25 = vpop.f32.mrb[5].mxu0  ;;  %v1085_v27 = vpop.f32.mrb[5].mxu1 }
 0x247   : > { %v1034_v28 = vadd.f32 %v1033_v25, %v1032_v21  ;;  %v1035_v29 = vpop.f32.mrb[6].mxu0  ;;  %v803_v30 = vpop.f32.mrb[6].mxu1 }
 0x248   : > { %v1036_v26 = vpop.f32.mrb[7].mxu0  ;;  %v1086_v31 = vpop.f32.mrb[7].mxu1 }
 0x249   : > { %v801_v32 = vadd.f32 %v1034_v28, %v800_v22  ;;  %v1037_v33 = vadd.f32 %v1036_v26, %v1035_v29 }
 0x24b   : > { %v807_v34 = vadd.f32 %v801_v32, %v1597_v23  ;;  %v804_v35 = vadd.f32 %v1037_v33, %v803_v30 }
 0x24d   : > { %809 = vst [vmem:[%s217_s18] sm:$0xff] %v807_v34  ;;  %v808_v36 = vadd.f32 %v804_v35, %v1600_v24 }
 0x24f   : > { %810 = vst [vmem:[%s217_s18 + $0x8] sm:$0xff] %v808_v36 }
 0x250   : > { %1309 = shalt.err (!%p1306_p2)
}
 0x251   : > { %s1310_s25 = scalar_lea.hbm %s1642_s27, 256  ;;  %s1314_s21 = scalar_lea.hbm %s1690_s3, 512 }
 0x252   : > { %p1311_p13 = scmp.ne.s32.totalorder %s1642_s27, %s1310_s25  ;;  %p1315_p4 = scmp.lt.u32.totalorder %s1642_s27, %s1690_s3 }
 0x253   : > { %p1316_p5 = scmp.lt.u32.totalorder %s1314_s21, %s1310_s25  ;;  %p1318_p11 = scmp.lt.u32.totalorder %s1310_s25, %s1642_s27 }
 0x254   : > { %p1312_p6 = pnand %p1311_p13, %p1708_p0 }
 0x255   : > { %p1317_p8 = por %p1316_p5, %p1315_p4 }
 0x256   : > { %p1313_p10 = pneg %p1312_p6 }
 0x257   : > { %p1319_p1 = por %p1318_p11, %p1317_p8 }
 0x259   : > { %p1320_p3 = pnand %p1319_p1, %p1313_p10 }
 0x25b   : > { %1323 = shalt.err (!%p1320_p3)
}
 0x25c   : > { %s1378_s30 = smov 128   ;;  %s1379_s18 = smov 8  }
 0x25d   : > { %1097 = dma.vmem_to_hbm [thread:$0]  (%p1708_p0), %s1637_s20, 256, %s1642_s27, %s812_s23, %s1378_s30, %s1378_s30, %s1379_s18  }
 0x25e PF: > { %s840_s17 = sand.u32 1, %s1354_s12   ;;  %p1709_p7 = scmp.ne.s32.totalorder %s1695_s19, 0 }
 0x25f   : > { %p1710_p9 = scmp.ge.s32.totalorder %s1366_s15, 2  ;;  %s841_s24 = scalar_lea.sflag [#allocation4], %s840_s17 }
 0x261   : > { %p1111_p12 = pnand %p1710_p9, %p1709_p7 }
 0x263   : > { %1349 = dma.done.wait (!%p1111_p12), %s841_s24, 256  }
 0x264   : > { %1351 = vsyncadd (!%p1111_p12), %s841_s24, 4294967040  ;;  %p17_p2 = scmp.ge.s32.totalorder %s1510_s4, 4   ;;  %s1711_s12 = smov %s1358_s13 }
 0x265   : > { %s1712_s13 = smov %s1362_s14  ;;  %s1713_s14 = smov %s1526_s9 }
 0x266   : > { %s1714_s15 = smov %s1510_s4  ;;  %19 = sbr.rel (!%p17_p2) target bundleno = 6 (0x6), region = 85 }
 0x26d   :  { %846 = vsyncpa [#allocation3], 1 }
 0x26e   :  { %848 = vsyncpa [#allocation3 + $0x1], 1 }
 0x26f   :  { %849 = vsyncpa [#allocation6], 1 }
 0x270   :  { %850 = vsyncpa [#allocation4], 1 }
 0x271   :  { %852 = vsyncpa [#allocation4 + $0x1], 1 }

</bundles_post_ra>
